<compile_context>
chip_gen: v7x
topology: tpu7x:2x2x1
jax: 0.10.0
libtpu: 0.0.40
codegen_flags: <defaults>
</compile_context>

<pallas_src>
import jax
import jax.numpy as jnp
import numpy as np
from jax import lax
from jax.experimental import pallas as pl
from jax.experimental.pallas import tpu as pltpu

_LANES = 128
_LANE_TILE_CAP = 2048        # roofline plateaus ~>=512 lanes; keep VMEM headroom on v7x
_STATIC_PERM_MAX_C = 64      # below this, the channel permutation is a static slice+concat


# ------------------------------ helpers -------------------------------------

def _vmem_capacity_bytes():
    try:
        return int(pltpu.get_tpu_info().vmem_capacity_bytes)
    except Exception:
        return 64 * 1024 * 1024  # conservative fallback (v7x per-TC VMEM)


def _choose_lane_tile(hw, c, vmem_cap):
    """Lane-tile width: a multiple of 128 (or the full HW extent).

    Sized so pass-2's resident working set -- double-buffered x and out tiles,
    the permuted/index temporaries and theta -- fits in half the per-TC VMEM.
    """
    budget = vmem_cap // 2
    per_lane = 4 * (6 * c + 8)             # bytes per lane of pass-2 working set (f32)
    max_t = (budget // per_lane) // _LANES * _LANES
    max_t = max(_LANES, min(_LANE_TILE_CAP, max_t))
    if hw <= max_t:
        return hw                          # single full-extent tile per batch
    # Prefer a large 128-multiple divisor of HW (no ragged tile -> no masking).
    for cand in range(max_t, max(_LANES, max_t // 2) - 1, -_LANES):
        if hw % cand == 0:
            return cand
    return max_t                           # ragged last tile: masked reads / clipped writes


def _permute_channels(x, perm):
    """Bit-exact index_select along the sublane (channel) axis, static permutation.

    Small C: static row slices + concat (always lowers).  Large C: dynamic
    gather along sublanes (XLU) via take_along_axis with a baked index constant.
    """
    c = x.shape[0]
    if c <= _STATIC_PERM_MAX_C:
        rows = [lax.slice_in_dim(x, int(p), int(p) + 1, axis=0) for p in perm]
        return jnp.concatenate(rows, axis=0)
    # TODO(synk): for very large C, if the sublane dynamic-gather lowering ever
    # binds, move the channel gather to DMA time (per-pair manual copies).
    idx = jnp.broadcast_to(
        jnp.asarray(np.asarray(perm, dtype=np.int32)[:, None]), x.shape)
    return jnp.take_along_axis(x, idx, axis=0)


# ----------------------------- Pallas kernels ------------------------------

def _make_partial_sum_kernel(c, tl, hw, ragged):
    """Per-channel sums of one (C, lane_tile) tile -> (C, 1) partial."""

    def kernel(x_ref, part_ref):
        x = x_ref[...].astype(jnp.float32)
        if ragged:
            # Lanes past HW in the overhanging last tile hold unspecified data:
            # zero them before summing. (Static no-op when HW divides evenly.)
            k = pl.program_id(1)
            lane = lax.broadcasted_iota(jnp.int32, (c, tl), 1)
            x = jnp.where(k * tl + lane < hw, x, 0.0)
        part_ref[...] = jnp.sum(x, axis=1, keepdims=True)

    return kernel


def _make_apply_kernel(perm):
    """out = x + (x[perm] - mean[perm]) * sign * theta on one (C, lane_tile) tile."""

    def kernel(x_ref, theta_ref, pmean_ref, sign_ref, o_ref):
        x = x_ref[...].astype(jnp.float32)
        permuted = _permute_channels(x, perm)            # exact channel index_select
        noise = (permuted - pmean_ref[...]) * sign_ref[...] * theta_ref[...]
        o_ref[...] = (x + noise).astype(o_ref.dtype)

    return kernel


# ------------------------------ wrapper -------------------------------------

def rotation_forward(x, theta, index1, index2, *, training=True, lane_tile=None):
    """x: (N,C,H,W); theta: (N,1,H,W); index1: (C,) int; index2: (C,) +-1.

    index1/index2 are static module state (generated in __init__ in the
    reference); they must be concrete here since index1 is baked into the kernel.
    """
    if not training:
        return x

    N, C, H, W = x.shape
    HW = H * W
    perm = tuple(int(i) for i in np.asarray(jax.device_get(index1)))
    sign_np = np.asarray(jax.device_get(index2), dtype=np.float32).reshape(C, 1)

    vmem_cap = _vmem_capacity_bytes()
    vmem_limit = (vmem_cap * 3) // 4
    tl = lane_tile if lane_tile is not None else _choose_lane_tile(HW, C, vmem_cap)
    num_tiles = (HW + tl - 1) // tl
    ragged = num_tiles * tl != HW

    # Free reshapes: no transpose, no extra HBM traffic.
    x3 = x.reshape(N, C, HW)
    theta3 = theta.reshape(N, 1, HW).astype(jnp.float32)

    # ---- Pass 1: per-(batch, lane-tile) channel sums.  No cross-step
    # accumulation, so both grid axes are "parallel" (keeps both v7x
    # TensorCores busy even for N=1); the tiny partials are summed outside.
    partials = pl.pallas_call(
        _make_partial_sum_kernel(C, tl, HW, ragged),
        out_shape=jax.ShapeDtypeStruct((N, num_tiles, C, 1), jnp.float32),
        grid=(N, num_tiles),
        in_specs=[pl.BlockSpec((pl.Squeezed(), C, tl), lambda n, k: (n, 0, k))],
        out_specs=pl.BlockSpec((pl.Squeezed(), pl.Squeezed(), C, 1),
                               lambda n, k: (n, k, 0, 0)),
        compiler_params=pltpu.CompilerParams(
            dimension_semantics=("parallel", "parallel"),
            vmem_limit_bytes=vmem_limit),
    )(x3)

    inv_count = 1.0 / float(N * HW)
    mean = jnp.sum(partials, axis=(0, 1)) * inv_count                 # (C, 1)
    pmean = jnp.take(mean, jnp.asarray(perm, dtype=jnp.int32), axis=0)  # permuted mean
    sign = jnp.asarray(sign_np)                                        # (C, 1)

    # ---- Pass 2: elementwise apply, tiled over (batch, lane tiles).  Ragged
    # last tile: out-of-bounds input lanes are garbage but their results are
    # clipped by Pallas' partial-block output write, so no masking is needed.
    out3 = pl.pallas_call(
        _make_apply_kernel(perm),
        out_shape=jax.ShapeDtypeStruct((N, C, HW), x.dtype),
        grid=(N, num_tiles),
        in_specs=[
            pl.BlockSpec((pl.Squeezed(), C, tl), lambda n, k: (n, 0, k)),  # x
            pl.BlockSpec((pl.Squeezed(), 1, tl), lambda n, k: (n, 0, k)),  # theta
            pl.BlockSpec((C, 1), lambda n, k: (0, 0)),                     # permuted mean
            pl.BlockSpec((C, 1), lambda n, k: (0, 0)),                     # sign
        ],
        out_specs=pl.BlockSpec((pl.Squeezed(), C, tl), lambda n, k: (n, 0, k)),
        compiler_params=pltpu.CompilerParams(
            dimension_semantics=("parallel", "parallel"),
            vmem_limit_bytes=vmem_limit),
    )(x3, theta3, pmean, sign)

    return out3.reshape(N, C, H, W)


# ----------------------- deterministic "module init" ------------------------

def make_rotation_params(dim, drop_rate=0.5, theta_mode="Gaussian", seed=0):
    """Replicates Rotation.__init__ / random_permutation deterministically."""
    if dim % 2 != 0:
        raise ValueError("Rotation requires an even channel count (pairwise swaps).")
    if theta_mode == "Gaussian":
        drop_std = (drop_rate / (1.0 - drop_rate)) ** 0.5
    elif theta_mode == "Uniform":
        drop_std = (3.0 * drop_rate / (1.0 - drop_rate)) ** 0.5
    else:
        raise ValueError(theta_mode)

    rng = np.random.RandomState(seed)
    shuffle = rng.permutation(dim)
    index1 = np.zeros(dim, dtype=np.int32)
    index2 = np.ones(dim, dtype=np.float32)
    for item in range(0, dim, 2):
        index1[shuffle[item]] = shuffle[item + 1]
        index1[shuffle[item + 1]] = shuffle[item]
        index2[shuffle[item]] = -1.0
    # TODO(synk): the PyTorch module pre-generates `pre_loop` permutations and
    # cycles through them per call; a single deterministic one is used here.
    return drop_std, index1, index2


def _reference(x, theta, index1, index2):
    mean = jnp.mean(x, axis=(0, 2, 3), keepdims=True)
    centered = x - mean
    permuted = jnp.take(centered, jnp.asarray(index1), axis=1)
    noise = permuted * jnp.asarray(index2).reshape(1, -1, 1, 1) * theta
    return x + noise


if __name__ == "__main__":
    N, C, H, W = 2, 8, 16, 16
    drop_std, index1, index2 = make_rotation_params(C, drop_rate=0.5,
                                                    theta_mode="Gaussian", seed=0)

    key = jax.random.PRNGKey(0)
    kx, kt = jax.random.split(key)
    x = jax.random.normal(kx, (N, C, H, W), dtype=jnp.float32)
    theta = drop_std * jnp.abs(jax.random.normal(kt, (N, 1, H, W), dtype=jnp.float32))

    out = jax.block_until_ready(rotation_forward(x, theta, index1, index2, training=True))
    ref = _reference(x, theta, index1, index2)
    assert out.shape == x.shape and out.dtype == x.dtype
    np.testing.assert_allclose(np.asarray(out), np.asarray(ref), rtol=1e-5, atol=1e-5)

    # Ragged lane-tiling path (HW not divisible by the lane tile): exercises the
    # in-kernel mask in pass 1 and the clipped partial-block writes in pass 2.
    H2 = W2 = 12                                   # HW = 144, lane_tile = 128
    x2 = jax.random.normal(kx, (N, C, H2, W2), dtype=jnp.float32)
    theta2 = drop_std * jnp.abs(jax.random.normal(kt, (N, 1, H2, W2), dtype=jnp.float32))
    out2 = jax.block_until_ready(
        rotation_forward(x2, theta2, index1, index2, training=True, lane_tile=128))
    ref2 = _reference(x2, theta2, index1, index2)
    np.testing.assert_allclose(np.asarray(out2), np.asarray(ref2), rtol=1e-5, atol=1e-5)

    # eval mode is identity
    out_eval = rotation_forward(x, theta, index1, index2, training=False)
    np.testing.assert_allclose(np.asarray(out_eval), np.asarray(x))

    print("KERNEL_OK")
</pallas_src>

<mosaic_0001>
module attributes {stable_mosaic.version = 11 : i64} {
  func.func @kernel(%arg0: i32, %arg1: i32, %arg2: memref<1x8x256xf32, #tpu.memory_space<vmem>>, %arg3: memref<1x1x8x1xf32, #tpu.memory_space<vmem>>) attributes {dimension_semantics = [#tpu.dimension_semantics<parallel>, #tpu.dimension_semantics<parallel>], iteration_bounds = array<i64: 2, 1>, scalar_prefetch = 0 : i64, scratch_operands = 0 : i64, tpu.core_type = #tpu.core_type<tc>, window_params = [{transform_indices = @transform_0, window_bounds = array<i64: 1, 8, 256>}, {transform_indices = @transform_1, window_bounds = array<i64: 1, 1, 8, 1>}]} {
    %c0 = arith.constant 0 : index
    %c0_0 = arith.constant 0 : index
    %c0_1 = arith.constant 0 : index
    %0 = vector.load %arg2[%c0, %c0_0, %c0_1] : memref<1x8x256xf32, #tpu.memory_space<vmem>>, vector<1x8x256xf32>
    %1 = vector.shape_cast %0 : vector<1x8x256xf32> to vector<8x256xf32>
    %cst = arith.constant dense<0.000000e+00> : vector<8xf32>
    %2 = vector.multi_reduction <add>, %1, %cst [1] : vector<8x256xf32> to vector<8xf32>
    %3 = vector.shape_cast %2 : vector<8xf32> to vector<8x1xf32>
    %c0_2 = arith.constant 0 : index
    %c0_3 = arith.constant 0 : index
    %c0_4 = arith.constant 0 : index
    %c0_5 = arith.constant 0 : index
    %4 = vector.load %arg3[%c0_2, %c0_3, %c0_4, %c0_5] : memref<1x1x8x1xf32, #tpu.memory_space<vmem>>, vector<1x1x8x1xf32>
    %5 = vector.shape_cast %4 : vector<1x1x8x1xf32> to vector<8x1xf32>
    %6 = vector.shape_cast %3 : vector<8x1xf32> to vector<1x1x8x1xf32>
    tpu.vector_store %arg3[%c0_2, %c0_3, %c0_4, %c0_5], %6 {strides = array<i32>} : memref<1x1x8x1xf32, #tpu.memory_space<vmem>>, vector<1x1x8x1xf32>,
    return
  }
  func.func @transform_0(%arg0: i32, %arg1: i32) -> (i32, i32, i32) {
    %c0_i32 = arith.constant 0 : i32
    %c0_i32_0 = arith.constant 0 : i32
    return %arg0, %c0_i32, %arg1 : i32, i32, i32
  }
  func.func @transform_1(%arg0: i32, %arg1: i32) -> (i32, i32, i32, i32) {
    %c0_i32 = arith.constant 0 : i32
    %c0_i32_0 = arith.constant 0 : i32
    %c0_i32_1 = arith.constant 0 : i32
    return %arg0, %arg1, %c0_i32, %c0_i32_0 : i32, i32, i32, i32
  }
}

</mosaic_0001>

<bundles_post_ra>
// kernel: tpu_custom_call.1
= control target key start
LH: loop header
LB: loop body
LE: loop exit
PB: predicated region body
PF: predicated region fallthrough
CT: control target
= control target key end

     0   :  { %6 = vsyncpa [#allocation3], 0  ;;  %s537_s0 = inlined_call_operand.hbm [shape: f32[2,8,256], index: 0, kind: input, shape index: {}]   ;;  %s538_s1 = inlined_call_operand.vmem [shape: f32[2,1,8,1], index: 1, kind: output, shape index: {}]  }
   0x1   :  { %8 = vsyncpa [#allocation3 + $0x1], 0  ;;  %s412_s6 = smov 0   ;;  %s414_s7 = smov 0  }
   0x2   :  { %s416_s8 = smov 0   ;;  %s418_s9 = smov 0  }
   0x3   :  { %s420_s10 = smov 0   ;;  %s422_s11 = smov 0  }
   0x4 LB: > { %s251_s12 = sadd.s32 4294967295, %s399_s11   ;;  %s26_s13 = sadd.s32 1, %s395_s10  ;;  %s399_s11 = sphi %s422_s11, %s14_s11   ;;  %s395_s10 = sphi %s420_s10, %s548_s10   ;;  %s391_s9 = sphi %s418_s9, %s547_s9   ;;  %s387_s8 = sphi %s416_s8, %s546_s8   ;;  %s383_s7 = sphi %s414_s7, %s545_s7   ;;  %s379_s6 = sphi %s412_s6, %s544_s6  }
   0x5   : > { %p28_p0 = scmp.ge.s32.totalorder %s26_s13, 2  ;;  %s35_s14 = sadd.s32 1, %s387_s8 }
   0x6   : > { %p42_p1 = scmp.ne.s32.totalorder %s387_s8, %s383_s7  ;;  %p43_p2 = scmp.eq.s32.totalorder %s399_s11, 0 }
   0x7   : > { %s550_s13 = smov (%p28_p0, %s26_s13), 0  ;;  %p48_p4 = scmp.ne.s32.totalorder %s383_s7, %s379_s6 }
   0x8   : > { %p448_p3 = por %p43_p2, %p42_p1  ;;  %s30_s16 = ssub.s32 %s395_s10, %s550_s13 }
   0x9   : > { %p49_p5 = scmp.eq.s32.totalorder %s251_s12, 0  ;;  %p33_p6 = scmp.eq.s32.totalorder %s30_s16, 0 }
   0xa   : > { %p270_p8 = scmp.lt.s32.totalorder %s399_s11, 2  ;;  %s100_s19 = sand.u32 1, %s387_s8  }
   0xb   : > { %p455_p7 = por %p49_p5, %p48_p4  ;;  %s263_s20 = sshll.u32 %s395_s10, 8 }
   0xc   : > { %s461_s18 = scalar_select %p33_p6, %s387_s8, %s35_s14  }
   0xd   : > { %s255_s21 = sshll.u32 %s100_s19, 4  ;;  %s468_s24 = scalar_lea.hbm %s537_s0, %s263_s20 }
   0xe   : > { %s104_s25 = scalar_lea.vmem [#allocation2], %s255_s21  ;;  %p472_p9 = pnand %p270_p8, %p448_p3 }
   0xf   : > { %s114_s26 = sshll.u32 %s104_s25, 4  ;;  %s101_s28 = scalar_lea.sflag [#allocation3], %s100_s19  ;;  %s476_s26 = int_to_ptr.vmem [resolvable:$true] %s114_s26 }
  0x10   : > { %s319_s29 = scalar_lea.hbm %s468_s24, 256  ;;  %p321_p13 = pneg %p472_p9 }
  0x11   : > { %p320_p12 = scmp.ne.s32.totalorder %s468_s24, %s319_s29  ;;  %s324_s3 = scalar_lea.hbm %s537_s0, 512 }
  0x12   : > { %p325_p2 = scmp.lt.u32.totalorder %s468_s24, %s537_s0  ;;  %p326_p3 = scmp.lt.u32.totalorder %s324_s3, %s319_s29 }
  0x13   : > { %p322_p0 = pnand %p321_p13, %p320_p12  ;;  %p328_p5 = scmp.lt.u32.totalorder %s319_s29, %s468_s24 }
  0x14   : > { %p327_p4 = por %p326_p3, %p325_p2 }
  0x15   : > { %p323_p1 = pneg %p322_p0 }
  0x16   : > { %p329_p6 = por %p328_p5, %p327_p4 }
  0x18   : > { %p330_p8 = pnand %p329_p6, %p323_p1 }
  0x1a   : > { %333 = shalt.err (!%p330_p8)
}
  0x1b   : > { %s334_s6 = scalar_lea.vmem %s476_s26, 256  ;;  %s401_s12 = smov [#allocation2]  }
  0x1c   : > { %p335_p12 = scmp.ne.s32.totalorder %s476_s26, %s334_s6  ;;  %s339_s14 = sshll.u32 %s401_s12, 4  ;;  %s340_s14 = int_to_ptr.vmem [resolvable:$false] %s339_s14 }
  0x1d   : > { %s341_s15 = scalar_lea.vmem %s340_s14, 512  ;;  %p342_p11 = scmp.lt.s32.totalorder %s476_s26, %s340_s14 }
  0x1e   : > { %p337_p0 = pnand %p335_p12, %p321_p13  ;;  %p343_p2 = scmp.lt.s32.totalorder %s341_s15, %s334_s6 }
  0x20   : > { %p338_p10 = pneg %p337_p0  ;;  %p344_p3 = por %p343_p2, %p342_p11 }
  0x22   : > { %p345_p4 = pnand %p344_p3, %p338_p10 }
  0x24   : > { %348 = shalt.err (!%p345_p4)
}
  0x25   : > { %269 = dma.hbm_to_vmem [thread:$0]  (!%p472_p9), %s468_s24, 256, %s476_s26, %s101_s28  }
  0x26   : > { %p542_p1 = scmp.lt.s32.totalorder %s399_s11, 3  ;;  %p543_p5 = scmp.ge.s32.totalorder %s399_s11, 1 }
  0x28   : > { %p120_p13 = pnand %p543_p5, %p542_p1 }
  0x29   : > { %s125_s16 = sand.u32 (!%p120_p13), 1, %s383_s7  }
  0x2a   : > { %123 = sbr.rel (%p120_p13) target bundleno = 196 (0xc4), region = 24  ;;  %s259_s19 = sshll.u32 (!%p120_p13), %s125_s16, 4 }
  0x2b   : > { %s126_s20 = scalar_lea.sflag (!%p120_p13), [#allocation3], %s125_s16  ;;  %s129_s21 = scalar_lea.vmem (!%p120_p13), [#allocation2], %s259_s19 }
  0x31   : > { %374 = dma.done.wait (%p455_p7), %s126_s20, 256  }
  0x32   : > { %376 = vsyncadd (%p455_p7), %s126_s20, 4294967040  ;;  %v158_v0 = vld [vmem:[%s129_s21] sm:$0xff]  ;;  %v159_v1 = vld [vmem:[%s129_s21 + $0x8] sm:$0xff]  ;;  %p151_p9 = scmp.lt.s32.totalorder %s391_s9, 1  ;;  %vm163_vm0 = vcmask 7168  }
  0x33   : > { %v160_v2 = vadd.f32 %v159_v1, %v158_v0 }
  0x34   : > { %s552_s9 = smov (!%p151_p9, %s391_s9), 1 }
  0x35   : > { %161 = vadd.xlane.f32.xlu0 %v160_v2  ;;  %s260_s22 = sshll.u32 %s552_s9, 3 }
  0x36   : > { %s157_s25 = scalar_lea.vmem %s538_s1, %s260_s22 }
  0xc2   : > { %v162_v3 = vpop.xlane.xlu0 %161 }
  0xc3   : > { %164 = vst.msk [vmem:[%s157_s25] sm:$0xff] %vm163_vm0, %v162_v3 }
  0xc4 PF: > { %s14_s11 = sadd.s32 1, %s399_s11   ;;  %s544_s6 = smov %s383_s7 }
  0xc5   : > { %p11_p7 = scmp.ge.s32.totalorder %s14_s11, 4   ;;  %s545_s7 = smov %s387_s8 }
  0xc6   : > { %s546_s8 = smov %s461_s18  ;;  %s547_s9 = smov %s395_s10 }
  0xc7   : > { %s548_s10 = smov %s550_s13  ;;  %13 = sbr.rel (!%p11_p7) target bundleno = 4 (0x4), region = 64 }
  0xce   :  { %190 = vsyncpa [#allocation3], 1 }
  0xcf   :  { %192 = vsyncpa [#allocation3 + $0x1], 1 }

</bundles_post_ra>
